<compile_context>
chip_gen: v6e
topology: v6e:2x2x1
jax: 0.10.0
libtpu: 0.0.40
codegen_flags: <defaults>
</compile_context>

<pallas_src>
import functools
import math

import jax
import jax.numpy as jnp
from jax.experimental import pallas as pl
from jax.experimental.pallas import tpu as pltpu


# ---------------------------------------------------------------------------
# Helpers
# ---------------------------------------------------------------------------
def _round_up(x: int, m: int) -> int:
    return (x + m - 1) // m * m


def _cdiv(a: int, b: int) -> int:
    return (a + b - 1) // b


# ---------------------------------------------------------------------------
# Kernels
# ---------------------------------------------------------------------------
def _linear_kernel(x_ref, w_ref, b_ref, o_ref, *, compute_dtype):
    # y = x @ W + b
    #   x: (TM, Din) f32   w: (Din, Dout_pad) compute_dtype   b: (1, Dout) f32
    #   o: (TM, Dout)  -- narrow, full-extent last dim (unpadded store)
    x = x_ref[...]
    if x.dtype != compute_dtype:
        # In-kernel cast: no extra HBM pass, operand bytes to the MXU shrink.
        x = x.astype(compute_dtype)
    acc = jnp.dot(x, w_ref[...], preferred_element_type=jnp.float32)
    nout = o_ref.shape[-1]
    # Bias add stays f32 (v5e has no bf16 VALU); only first `nout` cols stored.
    o_ref[...] = (acc[:, :nout] + b_ref[...]).astype(o_ref.dtype)


def _bcast_kernel(p_ref, o_ref):
    # pre_std.repeat(batch, 1): broadcast (1, Dout) -> (TM, Dout), unpadded.
    o_ref[...] = jnp.broadcast_to(p_ref[...], o_ref.shape).astype(o_ref.dtype)


# ---------------------------------------------------------------------------
# Module wrapper
# ---------------------------------------------------------------------------
class PredStdLayer:
    """JAX/Pallas port of the PyTorch PredStdLayer."""

    _MAX_TM = 1024  # batch tile cap; double-buffered footprint is tiny at Din=32

    def __init__(self, num_inputs: int, num_outputs: int, out_gain: float = 0.01,
                 state_independent_std: bool = False,
                 state_independent_init: float = 0.5,
                 compute_dtype=jnp.float32,
                 key: jax.Array | None = None):
        self._state_independent_std = state_independent_std
        self.num_inputs = num_inputs
        self.num_outputs = num_outputs
        self._compute_dtype = compute_dtype
        # Weight kept lane-padded (multiple of 128) for the MXU; output is NOT.
        self._dout_pad = _round_up(num_outputs, 128)

        if state_independent_std:
            # torch.nn.Parameter(init * ones(num_outputs))
            self._pre_std = jnp.full((1, num_outputs), state_independent_init,
                                     dtype=jnp.float32)
        else:
            # nn.Linear(num_inputs, num_outputs)
            #   weight: (num_outputs, num_inputs), xavier_uniform_ with gain=out_gain
            #   bias:   zeros(num_outputs)
            if key is None:
                key = jax.random.PRNGKey(0)
            bound = out_gain * math.sqrt(6.0 / (num_inputs + num_outputs))
            w = jax.random.uniform(key, (num_outputs, num_inputs),
                                   minval=-bound, maxval=bound, dtype=jnp.float32)
            self._weight = w                      # (Dout, Din) f32, PyTorch layout
            self._weight_t_pad = jnp.pad(         # (Din, Dout_pad) compute_dtype
                w.T, ((0, 0), (0, self._dout_pad - num_outputs))
            ).astype(compute_dtype)
            self._bias = jnp.zeros((1, num_outputs), dtype=jnp.float32)

    # -- tiling ------------------------------------------------------------
    def _tiling(self, batch: int):
        """Balanced batch tiles; grid >= 2 whenever batch >= 16 (v7x megacore)."""
        ntiles = max(1, _cdiv(_round_up(batch, 8), self._MAX_TM))
        if batch >= 16:
            ntiles = max(ntiles, 2)
        if ntiles == 1:
            tm = batch                       # full-extent block: always legal
        else:
            tm = _round_up(_cdiv(batch, ntiles), 8)
        grid_m = _cdiv(batch, tm)            # last tile may be partial (masked)
        return tm, grid_m

    # -- forward -----------------------------------------------------------
    def __call__(self, state: jax.Array) -> jax.Array:
        batch = state.shape[0]
        tm, grid_m = self._tiling(batch)
        nout = self.num_outputs
        cparams = pltpu.CompilerParams(dimension_semantics=("parallel",))

        if self._state_independent_std:
            cost = pl.CostEstimate(
                flops=0, transcendentals=0,
                bytes_accessed=4 * (nout + batch * nout))
            return pl.pallas_call(
                _bcast_kernel,
                out_shape=jax.ShapeDtypeStruct((batch, nout), jnp.float32),
                grid=(grid_m,),
                in_specs=[pl.BlockSpec((1, nout), lambda i: (0, 0))],
                out_specs=pl.BlockSpec((tm, nout), lambda i: (i, 0)),
                compiler_params=cparams,
                cost_estimate=cost,
            )(self._pre_std)

        # State-dependent path: y = x @ W^T + b, no wrapper pad/cast/slice.
        din = self.num_inputs
        x_bytes = jnp.dtype(state.dtype).itemsize
        w_bytes = jnp.dtype(self._compute_dtype).itemsize
        cost = pl.CostEstimate(
            flops=2 * batch * din * self._dout_pad, transcendentals=0,
            bytes_accessed=x_bytes * batch * din
            + w_bytes * din * self._dout_pad
            + 4 * (nout + batch * nout))

        kernel = functools.partial(_linear_kernel,
                                   compute_dtype=self._compute_dtype)
        return pl.pallas_call(
            kernel,
            out_shape=jax.ShapeDtypeStruct((batch, nout), jnp.float32),
            grid=(grid_m,),
            in_specs=[
                # x tiles stream over the batch grid (partial last tile OK).
                pl.BlockSpec((tm, din), lambda i: (i, 0)),
                # weight & bias: constant block index -> VMEM-resident.
                pl.BlockSpec((din, self._dout_pad), lambda i: (0, 0)),
                pl.BlockSpec((1, nout), lambda i: (0, 0)),
            ],
            out_specs=pl.BlockSpec((tm, nout), lambda i: (i, 0)),
            compiler_params=cparams,
            cost_estimate=cost,
        )(state, self._weight_t_pad, self._bias)


# ---------------------------------------------------------------------------
# Demo / smoke test
# ---------------------------------------------------------------------------
if __name__ == "__main__":
    key = jax.random.PRNGKey(0)
    k_x, k_w, k_x2 = jax.random.split(key, 3)

    batch, num_inputs, num_outputs = 8, 32, 16
    x = jax.random.normal(k_x, (batch, num_inputs), dtype=jnp.float32)

    # Path 1: state-dependent std (Linear, xavier_uniform_(gain=0.01), zero bias)
    layer = PredStdLayer(num_inputs, num_outputs, out_gain=0.01,
                         state_independent_std=False, key=k_w)
    y = jax.block_until_ready(layer(x))
    y_ref = x @ layer._weight.T + layer._bias[0]          # plain-JAX reference
    assert y.shape == (batch, num_outputs)
    assert jnp.allclose(y, y_ref, atol=1e-5, rtol=1e-5)

    # Path 1b: ragged batch (20 -> 2 tiles of 16, last partial) + bf16 operands
    batch2 = 20
    x2 = jax.random.normal(k_x2, (batch2, num_inputs), dtype=jnp.float32)
    layer_bf16 = PredStdLayer(num_inputs, num_outputs, out_gain=0.01,
                              state_independent_std=False,
                              compute_dtype=jnp.bfloat16, key=k_w)
    y2 = jax.block_until_ready(layer_bf16(x2))
    y2_ref = (x2.astype(jnp.bfloat16)
              @ layer_bf16._weight.T.astype(jnp.bfloat16)).astype(jnp.float32)
    assert y2.shape == (batch2, num_outputs)
    assert jnp.allclose(y2, y2_ref, atol=1e-2, rtol=1e-2)

    # Path 2: state-independent std (parameter broadcast to (batch, num_outputs))
    layer_si = PredStdLayer(num_inputs, num_outputs,
                            state_independent_std=True,
                            state_independent_init=0.5)
    y_si = jax.block_until_ready(layer_si(x))
    assert y_si.shape == (batch, num_outputs)
    assert jnp.allclose(y_si, jnp.full((batch, num_outputs), 0.5), atol=0.0)

    print("KERNEL_OK")
</pallas_src>

<mosaic_0001>
module attributes {stable_mosaic.version = 11 : i64} {
  func.func @_linear_kernel(%arg0: i32, %arg1: memref<8x32xf32, #tpu.memory_space<vmem>>, %arg2: memref<32x128xf32, #tpu.memory_space<vmem>>, %arg3: memref<1x16xf32, #tpu.memory_space<vmem>>, %arg4: memref<8x16xf32, #tpu.memory_space<vmem>>) attributes {dimension_semantics = [#tpu.dimension_semantics<parallel>], iteration_bounds = array<i64: 1>, scalar_prefetch = 0 : i64, scratch_operands = 0 : i64, tpu.core_type = #tpu.core_type<tc>, window_params = [{transform_indices = @transform_0, window_bounds = array<i64: 8, 32>}, {pipeline_mode = #tpu.pipeline_mode<synchronous>, transform_indices = @transform_1, window_bounds = array<i64: 32, 128>}, {pipeline_mode = #tpu.pipeline_mode<synchronous>, transform_indices = @transform_2, window_bounds = array<i64: 1, 16>}, {transform_indices = @transform_3, window_bounds = array<i64: 8, 16>}]} {
    %c0 = arith.constant 0 : index
    %c0_0 = arith.constant 0 : index
    %0 = vector.load %arg1[%c0, %c0_0] : memref<8x32xf32, #tpu.memory_space<vmem>>, vector<8x32xf32>
    %c0_1 = arith.constant 0 : index
    %c0_2 = arith.constant 0 : index
    %1 = vector.load %arg2[%c0_1, %c0_2] : memref<32x128xf32, #tpu.memory_space<vmem>>, vector<32x128xf32>
    %cst = arith.constant dense<0.000000e+00> : vector<8x128xf32>
    %2 = tpu.matmul %0, %1, %cst {dimension_numbers = #tpu.dot_dimension_numbers<[1], [0], [0], [1], [0, 0, 1, 1], [], []>} : vector<8x32xf32>, vector<32x128xf32>, vector<8x128xf32> -> vector<8x128xf32>
    %3 = vector.extract_strided_slice %2 {offsets = [0, 0], sizes = [8, 16], strides = [1, 1]} : vector<8x128xf32> to vector<8x16xf32>
    %c0_3 = arith.constant 0 : index
    %c0_4 = arith.constant 0 : index
    %4 = vector.load %arg3[%c0_3, %c0_4] : memref<1x16xf32, #tpu.memory_space<vmem>>, vector<1x16xf32>
    %5 = vector.broadcast %4 : vector<1x16xf32> to vector<8x16xf32>
    %6 = arith.addf %3, %5 : vector<8x16xf32>
    %c0_5 = arith.constant 0 : index
    %c0_6 = arith.constant 0 : index
    %7 = vector.load %arg4[%c0_5, %c0_6] : memref<8x16xf32, #tpu.memory_space<vmem>>, vector<8x16xf32>
    tpu.vector_store %arg4[%c0_5, %c0_6], %6 {strides = array<i32>} : memref<8x16xf32, #tpu.memory_space<vmem>>, vector<8x16xf32>,
    return
  }
  func.func @transform_0(%arg0: i32) -> (i32, i32) {
    %c0_i32 = arith.constant 0 : i32
    %c0_i32_0 = arith.constant 0 : i32
    return %arg0, %c0_i32 : i32, i32
  }
  func.func @transform_1(%arg0: i32) -> (i32, i32) {
    %c0_i32 = arith.constant 0 : i32
    %c0_i32_0 = arith.constant 0 : i32
    %c0_i32_1 = arith.constant 0 : i32
    return %c0_i32, %c0_i32_0 : i32, i32
  }
  func.func @transform_2(%arg0: i32) -> (i32, i32) {
    %c0_i32 = arith.constant 0 : i32
    %c0_i32_0 = arith.constant 0 : i32
    %c0_i32_1 = arith.constant 0 : i32
    return %c0_i32, %c0_i32_0 : i32, i32
  }
  func.func @transform_3(%arg0: i32) -> (i32, i32) {
    %c0_i32 = arith.constant 0 : i32
    %c0_i32_0 = arith.constant 0 : i32
    return %arg0, %c0_i32 : i32, i32
  }
}

</mosaic_0001>

<bundles_post_ra>
// kernel: tpu_custom_call.1
= control target key start
LH: loop header
LB: loop body
LE: loop exit
PB: predicated region body
PF: predicated region fallthrough
CT: control target
= control target key end

     0   :  { %8 = vsyncpa [#allocation3], 0  ;;  %s276_s0 = inlined_call_operand.hbm [shape: f32[8,32], index: 0, kind: input, shape index: {}]   ;;  %s277_s1 = inlined_call_operand.hbm [shape: f32[32,128], index: 1, kind: input, shape index: {}]   ;;  %s278_s2 = inlined_call_operand.vmem [shape: f32[1,16], index: 2, kind: input, shape index: {}]   ;;  %s279_s3 = inlined_call_operand.hbm [shape: f32[8,16], index: 3, kind: output, shape index: {}]  }
   0x1   :  { %9 = vsyncpa [#allocation6], 0 }
   0x2   :  { %10 = vsyncpa [#allocation4], 0  ;;  %s237_s12 = smov [#allocation2]   ;;  %s238_s14 = smov [#allocation5]  }
   0x3   :  { %s17_s13 = sshll.u32 %s237_s12, 4  ;;  %s26_s15 = sshll.u32 %s238_s14, 4  ;;  %s18_s13 = int_to_ptr.vmem [resolvable:$true] %s17_s13  ;;  %s27_s15 = int_to_ptr.vmem [resolvable:$true] %s26_s15 }
   0x4   :  { %s179_s16 = scalar_lea.vmem %s18_s13, 128  ;;  %p184_p1 = scmp.lt.s32.totalorder %s18_s13, %s18_s13 }
   0x5   :  { %p180_p0 = scmp.ne.s32.totalorder %s18_s13, %s179_s16  ;;  %p185_p2 = scmp.lt.s32.totalorder %s179_s16, %s179_s16 }
   0x7   :  { %p186_p3 = por %p185_p2, %p184_p1 }
   0x9   :  { %p187_p4 = pnand %p186_p3, %p180_p0 }
   0xb   :  { %190 = shalt.err (!%p187_p4)
}
   0xc   :  { %20 = dma.hbm_to_vmem [thread:$0]  %s276_s0, 128, %s18_s13, [#allocation3]  }
   0xd   :  { %s199_s19 = scalar_lea.vmem %s27_s15, 512  ;;  %p204_p6 = scmp.lt.s32.totalorder %s27_s15, %s27_s15 }
   0xe   :  { %p200_p5 = scmp.ne.s32.totalorder %s27_s15, %s199_s19  ;;  %p205_p7 = scmp.lt.s32.totalorder %s199_s19, %s199_s19 }
  0x10   :  { %p206_p8 = por %p205_p7, %p204_p6 }
  0x12   :  { %p207_p9 = pnand %p206_p8, %p200_p5 }
  0x14   :  { %210 = shalt.err (!%p207_p9)
}
  0x15   :  { %s239_s20 = smov 128   ;;  %s240_s21 = smov 8  }
  0x16   :  { %32 = dma.hbm_to_vmem [thread:$0]  %s277_s1, 512, %s27_s15, [#allocation6], %s239_s20, %s239_s20, %s240_s21  }
  0x17   :  { %231 = dma.done.wait [#allocation3], 128  }
  0x18   :  { %232 = vsyncadd [#allocation3], 4294967168 }
  0x19   :  { %233 = dma.done.wait [#allocation6], 512  }
  0x1a   :  { %234 = vsyncadd [#allocation6], 4294966784  ;;  %v241_v0 = vmov 0.0   ;;  %vm242_vm0 = vmmov 0   ;;  %v45_v1 = vld [vmem:[#allocation5 + $0x18] sm:$0xff]  ;;  %v44_v2 = vld [vmem:[#allocation5 + $0x10] sm:$0xff] }
  0x1b   :  { %153 = vmatprep.subr.mxu0 %v241_v0  ;;  %161 = vmatprep.mubr.msk.f32.mxu0 %vm242_vm0, %v241_v0  ;;  %v43_v3 = vld [vmem:[#allocation5 + $0x8] sm:$0xff]  ;;  %v42_v4 = vld [vmem:[#allocation5] sm:$0xff]  ;;  %v41_v5 = vld [vmem:[#allocation2] sm:$0xff]  ;;  %vm46_vm1 = vcmask 261120   ;;  %s243_s24 = smov [#allocation7]   ;;  %vm128_vm2 = vcmask 130048  }
  0x1c   :  { %154 = vmatpush3.msra.mxu0 %v45_v1  ;;  %v147_v6 = vld [vmem:[%s278_s2] ss:$0 sm:$0xff]  ;;  %s136_s25 = sshll.u32 %s243_s24, 4  ;;  %s137_s25 = int_to_ptr.vmem [resolvable:$true] %s136_s25 }
  0x1d   :  { %155 = vmatprep.subr.mxu0 %v241_v0  ;;  %s211_s26 = scalar_lea.vmem %s137_s25, 128  ;;  %p216_p11 = scmp.lt.s32.totalorder %s137_s25, %s137_s25 }
  0x1e   :  { %156 = vmatpush3.msra.mxu0 %v44_v2  ;;  %p212_p10 = scmp.ne.s32.totalorder %s137_s25, %s211_s26  ;;  %p217_p12 = scmp.lt.s32.totalorder %s211_s26, %s211_s26 }
  0x1f   :  { %157 = vmatprep.subr.mxu0 %v241_v0 }
  0x20   :  { %158 = vmatpush3.msra.mxu0 %v43_v3  ;;  %p218_p13 = por %p217_p12, %p216_p11 }
  0x21   :  { %159 = vmatprep.subr.mxu0 %v241_v0 }
  0x22   :  { %160 = vmatpush3.msra.mxu0 %v42_v4  ;;  %p219_p0 = pnand %p218_p13, %p212_p10 }
  0x23   :  { %162 = vmatmul.mubr.msk.f32.vlgmr.msra.gmra.mxu0 %vm46_vm1, %v41_v5 }
  0xe3   :  { %v116_v7 = vpop.f32.mrf.mxu0 }
  0xe4   :  { %v127_v8 = vadd.f32 %v147_v6, %v116_v7 }
  0xe5   :  { %v163_v9 = vpop.f32.mrf.mxu0 }
  0xe6   :  { %129 = vst.msk [vmem:[#allocation7] sm:$0xff] %vm128_vm2, %v127_v8 }
  0xe7   :  { %222 = shalt.err (!%p219_p0)
}
  0xe8   :  { %139 = dma.vmem_to_hbm [thread:$0]  %s137_s25, 128, %s279_s3, [#allocation4]  }
  0xe9   :  { %235 = dma.done.wait [#allocation4], 128  }
  0xea   :  { %236 = vsyncadd [#allocation4], 4294967168 }
  0xeb   :  { %143 = vsyncpa [#allocation3], 1 }
  0xec   :  { %144 = vsyncpa [#allocation6], 1 }
  0xed   :  { %145 = vsyncpa [#allocation4], 1 }

</bundles_post_ra>
